<compile_context>
chip_gen: v6e
topology: v6e:2x2x1
jax: 0.10.0
libtpu: 0.0.40
codegen_flags: <defaults>
</compile_context>

<pallas_src>
import jax
import jax.numpy as jnp
from jax.experimental import pallas as pl
from jax.experimental.pallas import tpu as pltpu


# ----------------------------------------------------------------------------
# Kernel
# ----------------------------------------------------------------------------
def mistral_mlp_kernel(x_ref, wg_ref, bg_ref, wu_ref, bu_ref, wd_ref, bd_ref,
                       o_ref, acc_ref):
    """One (token-tile i, D_h-tile j) step of the fused MLP.

    x_ref  : [tm, D_mlp]      activations (bf16 preferred)
    wg_ref : [D_mlp, tn]      gate_proj weight slice (pre-transposed)
    bg_ref : [1, tn]          gate_proj bias slice (f32)
    wu_ref : [D_mlp, tn]      up_proj weight slice
    bu_ref : [1, tn]          up_proj bias slice (f32)
    wd_ref : [tn, D_mlp]      down_proj weight slice (K-slice of the reduction)
    bd_ref : [1, D_mlp]       down_proj bias (f32), added once in finalize
    o_ref  : [tm, D_mlp]      output tile (same block across all j -> resident)
    acc_ref: [tm, D_mlp] f32  VMEM accumulator for the down_proj reduction
    """
    j = pl.program_id(1)

    @pl.when(j == 0)
    def _init():
        acc_ref[...] = jnp.zeros_like(acc_ref)

    x = x_ref[...]

    # gate matmul on the MXU (f32 accumulation), bias add + SiLU in f32.
    g = jnp.dot(x, wg_ref[...], preferred_element_type=jnp.float32) + bg_ref[...]
    g = g * jax.nn.sigmoid(g)          # SiLU in place: only 2 live f32 temps

    # up matmul + gating, still f32 on the VPU/EUP.
    u = jnp.dot(x, wu_ref[...], preferred_element_type=jnp.float32) + bu_ref[...]
    h = g * u                          # [tm, tn] f32

    # Partial down_proj contribution for this D_h slice; accumulate in f32.
    acc_ref[...] += jnp.dot(h.astype(wd_ref.dtype), wd_ref[...],
                            preferred_element_type=jnp.float32)

    @pl.when(j == pl.num_programs(1) - 1)
    def _finalize():
        o_ref[...] = (acc_ref[...] + bd_ref[...]).astype(o_ref.dtype)


# ----------------------------------------------------------------------------
# Per-generation sizing helpers
# ----------------------------------------------------------------------------
# (tm, tn, vmem_limit_bytes) per TPU generation (from the roofline analysis:
# weights are streamed once per token tile, so we need tm above ~240 FLOP/byte
# on v5e, ~650 on v6e, ~310 per-TC on v7x; tm multiples of 256 on v6e/v7x for
# the 2x256 MXU, 128 on v5e's 4x128 MXU).
_GEN_DEFAULTS = {
    "v5e": (384, 256, 100 * 1024 * 1024),
    "v6e": (768, 256, 104 * 1024 * 1024),
    "v7x": (512, 256, 56 * 1024 * 1024),
    None:  (256, 256, 48 * 1024 * 1024),   # conservative fallback
}


def _tpu_generation():
    try:
        kind = jax.devices()[0].device_kind.lower()
    except Exception:
        return None
    if "v5e" in kind or "v5 lite" in kind or "v5lite" in kind:
        return "v5e"
    if "v6" in kind:
        return "v6e"
    if "v7" in kind or "tpu7" in kind:
        return "v7x"
    return None


def _vmem_bytes(tm, tn, d_mlp, w_bytes=2, x_bytes=2, o_bytes=2):
    """Approximate VMEM demand of one pipeline stage set.

    3 double-buffered weight slices (wg/wu/wd, each d_mlp*tn) plus the
    token-tile blocks: x (double-buffered), f32 accumulator, out (double-buf).
    """
    weights = 3 * 2 * d_mlp * tn * w_bytes
    tokens = tm * d_mlp * (2 * x_bytes + 4 + 2 * o_bytes)
    return weights + tokens


def _fit_tile(total, cap, align):
    """Largest tile <= cap that divides `total`, aligned to `align`.

    Falls back to the full extent when no aligned divisor exists (a full-extent
    block is always layout-legal)."""
    cap = min(cap, total)
    t = (cap // align) * align
    while t >= align:
        if total % t == 0:
            return t
        t -= align
    return total


# ----------------------------------------------------------------------------
# Wrapper
# ----------------------------------------------------------------------------
def mistral_mlp(x, params, *, tm=None, tn=None, vmem_limit_bytes=None):
    """x: [T, D_mlp] -> [T, D_mlp].

    params = (wg, bg, wu, bu, wd, bd) with weights pre-transposed to
    [in_features, out_features] and biases shaped [1, out_features] (f32).

    Tile guidance (VMEM ~= 12*D_mlp*tn + 12*tm*D_mlp bytes with bf16
    weights/activations and the f32 accumulator; see _vmem_bytes):
      v5e (128 MiB phys):  tm=256-384 (mult. of 128), tn=256, limit ~100 MiB
      v6e (128 MiB phys):  tm=640-768 (mult. of 256), tn=256, limit ~104 MiB
      v7x ( 64 MiB / TC):  tm=384-512 (mult. of 256), tn=256, limit <= ~56 MiB
    Weights are re-streamed once per token tile, so arithmetic intensity is
    ~tm FLOPs per weight byte; the defaults above put every generation in the
    MXU-bound regime.  On v7x keep T//tm even so both TensorCores get work.
    """
    wg, bg, wu, bu, wd, bd = params
    T, d_mlp = x.shape
    d_h = wg.shape[1]

    gen = _tpu_generation()
    tm_def, tn_def, vmem_def = _GEN_DEFAULTS.get(gen, _GEN_DEFAULTS[None])

    if vmem_limit_bytes is None:
        vmem_limit_bytes = vmem_def
    if tn is None:
        tn = _fit_tile(d_h, tn_def, 128)
    if tm is None:
        tm = _fit_tile(T, tm_def, 8)
        # Shrink tm until the tile set fits the per-generation VMEM budget.
        budget = int(0.85 * vmem_limit_bytes)
        while _vmem_bytes(tm, tn, d_mlp) > budget and tm > 128:
            smaller = _fit_tile(T, tm // 2, 8)
            if smaller >= tm:
                break
            tm = smaller
        # v7x megacore: keep the parallel token axis even so neither TC idles.
        if gen == "v7x" and (T // tm) % 2 != 0 and T // tm >= 1 and tm > 8:
            smaller = _fit_tile(T, tm // 2, 8)
            if smaller < tm and (T // smaller) % 2 == 0:
                tm = smaller

    assert T % tm == 0, (T, tm)
    assert d_h % tn == 0, (d_h, tn)

    # Keep all three matmuls on the fast (bf16) MXU path: cast x to the weight
    # dtype before the kernel; the output keeps x's original dtype.
    x_in = x if x.dtype == wg.dtype else x.astype(wg.dtype)

    grid = (T // tm, d_h // tn)

    return pl.pallas_call(
        mistral_mlp_kernel,
        out_shape=jax.ShapeDtypeStruct((T, d_mlp), x.dtype),
        grid_spec=pltpu.PrefetchScalarGridSpec(
            num_scalar_prefetch=0,
            grid=grid,
            in_specs=[
                # x block index is constant along j -> no re-DMA between j steps.
                pl.BlockSpec((tm, d_mlp), lambda i, j: (i, 0)),   # x tile
                pl.BlockSpec((d_mlp, tn), lambda i, j: (0, j)),   # W_gate^T slice
                pl.BlockSpec((1, tn),     lambda i, j: (0, j)),   # b_gate slice
                pl.BlockSpec((d_mlp, tn), lambda i, j: (0, j)),   # W_up^T slice
                pl.BlockSpec((1, tn),     lambda i, j: (0, j)),   # b_up slice
                pl.BlockSpec((tn, d_mlp), lambda i, j: (j, 0)),   # W_down^T slice
                pl.BlockSpec((1, d_mlp),  lambda i, j: (0, 0)),   # b_down
            ],
            # Output block index constant along j -> resident accumulator tile;
            # flushed to HBM only after the last j step for each i.
            out_specs=pl.BlockSpec((tm, d_mlp), lambda i, j: (i, 0)),
            scratch_shapes=[pltpu.VMEM((tm, d_mlp), jnp.float32)],
        ),
        compiler_params=pltpu.CompilerParams(
            dimension_semantics=("parallel", "arbitrary"),
            vmem_limit_bytes=vmem_limit_bytes,
        ),
    )(x_in, wg, bg, wu, bu, wd, bd)


# ----------------------------------------------------------------------------
# Params + pure-JAX reference
# ----------------------------------------------------------------------------
def init_params(key, hidden_dim, mlp_hidden_dim, dtype=jnp.bfloat16):
    """Deterministic synthetic params mimicking nn.Linear init.

    PyTorch Linear weight is [out, in]; we store transposed [in, out].
    Weights in `dtype` (bf16 for the MXU); biases kept in f32."""
    ks = jax.random.split(key, 6)
    scale_g = 1.0 / jnp.sqrt(mlp_hidden_dim)  # gate/up: in = mlp_hidden_dim
    scale_d = 1.0 / jnp.sqrt(hidden_dim)      # down:    in = hidden_dim

    def u(k, shape, scale, dt):
        return jax.random.uniform(k, shape, jnp.float32, -scale, scale).astype(dt)

    wg = u(ks[0], (mlp_hidden_dim, hidden_dim), scale_g, dtype)
    bg = u(ks[1], (1, hidden_dim), scale_g, jnp.float32)
    wu = u(ks[2], (mlp_hidden_dim, hidden_dim), scale_g, dtype)
    bu = u(ks[3], (1, hidden_dim), scale_g, jnp.float32)
    wd = u(ks[4], (hidden_dim, mlp_hidden_dim), scale_d, dtype)
    bd = u(ks[5], (1, mlp_hidden_dim), scale_d, jnp.float32)
    return wg, bg, wu, bu, wd, bd


def mistral_mlp_ref(x, params):
    """Pure-JAX dtype-consistent reference (bf16 matmuls, f32 accumulation)."""
    wg, bg, wu, bu, wd, bd = params
    xb = x.astype(wg.dtype)
    g = jnp.dot(xb, wg, preferred_element_type=jnp.float32) + bg
    u = jnp.dot(xb, wu, preferred_element_type=jnp.float32) + bu
    h = (g * jax.nn.sigmoid(g)) * u
    out = jnp.dot(h.astype(wd.dtype), wd, preferred_element_type=jnp.float32) + bd
    return out.astype(x.dtype)


# ----------------------------------------------------------------------------
# Demo
# ----------------------------------------------------------------------------
if __name__ == "__main__":
    # Small but TPU-layout-friendly shapes: feature dims are multiples of 128
    # (lane-dense output stores); D_h is split into 2 reduction steps in run (1)
    # so the resident-accumulator / finalize path is exercised.
    hidden_dim = 256        # D_h   (gate/up output dim, tiled by tn)
    mlp_hidden_dim = 256    # D_mlp (input & output feature dim)
    batch, seq = 2, 64
    T = batch * seq

    key = jax.random.PRNGKey(0)
    kx, kp = jax.random.split(key)
    # x conceptually [batch, seq, mlp_hidden_dim]; flatten tokens for the kernel.
    x = jax.random.normal(kx, (batch, seq, mlp_hidden_dim),
                          jnp.float32).astype(jnp.bfloat16)
    params = init_params(kp, hidden_dim, mlp_hidden_dim, dtype=jnp.bfloat16)

    x2d = x.reshape(T, mlp_hidden_dim)
    ref = mistral_mlp_ref(x2d, params)

    # (1) explicit small tiles -> grid (2, 2): parallel token axis + D_h
    #     reduction with f32 accumulator init/finalize.
    out = jax.block_until_ready(mistral_mlp(x2d, params, tm=64, tn=128))
    assert out.shape == (T, mlp_hidden_dim)
    err = jnp.max(jnp.abs(out.astype(jnp.float32) - ref.astype(jnp.float32)))
    assert err < 5e-2, f"tiled run: max abs err {err}"

    # (2) auto-config path: per-generation tm/tn/vmem defaults (clamped to the
    #     small demo extents), x-dtype cast, VMEM-formula shrink.
    out2 = jax.block_until_ready(mistral_mlp(x2d, params))
    err2 = jnp.max(jnp.abs(out2.astype(jnp.float32) - ref.astype(jnp.float32)))
    assert err2 < 5e-2, f"auto run: max abs err {err2}"

    _ = out.reshape(batch, seq, mlp_hidden_dim)  # restore [B, S, mlp_hidden_dim]
    print("KERNEL_OK")
</pallas_src>

<mosaic_0001>
module attributes {stable_mosaic.version = 11 : i64} {
  func.func @mistral_mlp_kernel(%arg0: i32, %arg1: i32, %arg2: memref<64x256xbf16, #tpu.memory_space<vmem>>, %arg3: memref<256x128xbf16, #tpu.memory_space<vmem>>, %arg4: memref<1x128xf32, #tpu.memory_space<vmem>>, %arg5: memref<256x128xbf16, #tpu.memory_space<vmem>>, %arg6: memref<1x128xf32, #tpu.memory_space<vmem>>, %arg7: memref<128x256xbf16, #tpu.memory_space<vmem>>, %arg8: memref<1x256xf32, #tpu.memory_space<vmem>>, %arg9: memref<64x256xbf16, #tpu.memory_space<vmem>>, %arg10: memref<64x256xf32, #tpu.memory_space<vmem>>) attributes {dimension_semantics = [#tpu.dimension_semantics<parallel>, #tpu.dimension_semantics<arbitrary>], iteration_bounds = array<i64: 2, 2>, scalar_prefetch = 0 : i64, scratch_operands = 1 : i64, tpu.core_type = #tpu.core_type<tc>, window_params = [{transform_indices = @transform_0, window_bounds = array<i64: 64, 256>}, {transform_indices = @transform_1, window_bounds = array<i64: 256, 128>}, {transform_indices = @transform_2, window_bounds = array<i64: 1, 128>}, {transform_indices = @transform_3, window_bounds = array<i64: 256, 128>}, {transform_indices = @transform_4, window_bounds = array<i64: 1, 128>}, {transform_indices = @transform_5, window_bounds = array<i64: 128, 256>}, {pipeline_mode = #tpu.pipeline_mode<synchronous>, transform_indices = @transform_6, window_bounds = array<i64: 1, 256>}, {transform_indices = @transform_7, window_bounds = array<i64: 64, 256>}]} {
    %c0_i32 = arith.constant 0 : i32
    %0 = arith.cmpi eq, %arg1, %c0_i32 : i32
    %1 = arith.extui %0 : i1 to i32
    %c0_i32_0 = arith.constant 0 : i32
    %2 = arith.cmpi ne, %1, %c0_i32_0 : i32
    scf.if %2 {
      %cst_20 = arith.constant 0.000000e+00 : f32
      %30 = vector.broadcast %cst_20 : f32 to vector<64x256xf32>
      %c0_21 = arith.constant 0 : index
      %c0_22 = arith.constant 0 : index
      %31 = vector.load %arg10[%c0_21, %c0_22] : memref<64x256xf32, #tpu.memory_space<vmem>>, vector<64x256xf32>
      tpu.vector_store %arg10[%c0_21, %c0_22], %30 {strides = array<i32>} : memref<64x256xf32, #tpu.memory_space<vmem>>, vector<64x256xf32>,
    } else {
    }
    %c0 = arith.constant 0 : index
    %c0_1 = arith.constant 0 : index
    %3 = vector.load %arg2[%c0, %c0_1] : memref<64x256xbf16, #tpu.memory_space<vmem>>, vector<64x256xbf16>
    %c0_2 = arith.constant 0 : index
    %c0_3 = arith.constant 0 : index
    %4 = vector.load %arg3[%c0_2, %c0_3] : memref<256x128xbf16, #tpu.memory_space<vmem>>, vector<256x128xbf16>
    %cst = arith.constant dense<0.000000e+00> : vector<64x128xf32>
    %5 = tpu.matmul %3, %4, %cst {dimension_numbers = #tpu.dot_dimension_numbers<[1], [0], [0], [1], [0, 0, 1, 1], [], []>} : vector<64x256xbf16>, vector<256x128xbf16>, vector<64x128xf32> -> vector<64x128xf32>
    %c0_4 = arith.constant 0 : index
    %c0_5 = arith.constant 0 : index
    %6 = vector.load %arg4[%c0_4, %c0_5] : memref<1x128xf32, #tpu.memory_space<vmem>>, vector<1x128xf32>
    %7 = vector.broadcast %6 : vector<1x128xf32> to vector<64x128xf32>
    %8 = arith.addf %5, %7 : vector<64x128xf32>
    %9 = arith.negf %8 : vector<64x128xf32>
    %10 = math.exp %9 : vector<64x128xf32>
    %cst_6 = arith.constant 1.000000e+00 : f32
    %11 = vector.broadcast %cst_6 : f32 to vector<64x128xf32>
    %12 = arith.addf %11, %10 : vector<64x128xf32>
    %13 = arith.divf %11, %12 : vector<64x128xf32>
    %14 = arith.mulf %8, %13 : vector<64x128xf32>
    %c0_7 = arith.constant 0 : index
    %c0_8 = arith.constant 0 : index
    %15 = vector.load %arg5[%c0_7, %c0_8] : memref<256x128xbf16, #tpu.memory_space<vmem>>, vector<256x128xbf16>
    %cst_9 = arith.constant dense<0.000000e+00> : vector<64x128xf32>
    %16 = tpu.matmul %3, %15, %cst_9 {dimension_numbers = #tpu.dot_dimension_numbers<[1], [0], [0], [1], [0, 0, 1, 1], [], []>} : vector<64x256xbf16>, vector<256x128xbf16>, vector<64x128xf32> -> vector<64x128xf32>
    %c0_10 = arith.constant 0 : index
    %c0_11 = arith.constant 0 : index
    %17 = vector.load %arg6[%c0_10, %c0_11] : memref<1x128xf32, #tpu.memory_space<vmem>>, vector<1x128xf32>
    %18 = vector.broadcast %17 : vector<1x128xf32> to vector<64x128xf32>
    %19 = arith.addf %16, %18 : vector<64x128xf32>
    %20 = arith.mulf %14, %19 : vector<64x128xf32>
    %c0_12 = arith.constant 0 : index
    %c0_13 = arith.constant 0 : index
    %21 = vector.load %arg10[%c0_12, %c0_13] : memref<64x256xf32, #tpu.memory_space<vmem>>, vector<64x256xf32>
    %22 = arith.truncf %20 : vector<64x128xf32> to vector<64x128xbf16>
    %c0_14 = arith.constant 0 : index
    %c0_15 = arith.constant 0 : index
    %23 = vector.load %arg7[%c0_14, %c0_15] : memref<128x256xbf16, #tpu.memory_space<vmem>>, vector<128x256xbf16>
    %cst_16 = arith.constant dense<0.000000e+00> : vector<64x256xf32>
    %24 = tpu.matmul %22, %23, %cst_16 {dimension_numbers = #tpu.dot_dimension_numbers<[1], [0], [0], [1], [0, 0, 1, 1], [], []>} : vector<64x128xbf16>, vector<128x256xbf16>, vector<64x256xf32> -> vector<64x256xf32>
    %25 = arith.addf %21, %24 : vector<64x256xf32>
    %c0_17 = arith.constant 0 : index
    %c0_18 = arith.constant 0 : index
    %26 = vector.load %arg10[%c0_17, %c0_18] : memref<64x256xf32, #tpu.memory_space<vmem>>, vector<64x256xf32>
    tpu.vector_store %arg10[%c0_17, %c0_18], %25 {strides = array<i32>} : memref<64x256xf32, #tpu.memory_space<vmem>>, vector<64x256xf32>,
    %c1_i32 = arith.constant 1 : i32
    %27 = arith.cmpi eq, %arg1, %c1_i32 : i32
    %28 = arith.extui %27 : i1 to i32
    %c0_i32_19 = arith.constant 0 : i32
    %29 = arith.cmpi ne, %28, %c0_i32_19 : i32
    scf.if %29 {
      %c0_20 = arith.constant 0 : index
      %c0_21 = arith.constant 0 : index
      %30 = vector.load %arg10[%c0_20, %c0_21] : memref<64x256xf32, #tpu.memory_space<vmem>>, vector<64x256xf32>
      %c0_22 = arith.constant 0 : index
      %c0_23 = arith.constant 0 : index
      %31 = vector.load %arg8[%c0_22, %c0_23] : memref<1x256xf32, #tpu.memory_space<vmem>>, vector<1x256xf32>
      %32 = vector.broadcast %31 : vector<1x256xf32> to vector<64x256xf32>
      %33 = arith.addf %30, %32 : vector<64x256xf32>
      %34 = arith.truncf %33 : vector<64x256xf32> to vector<64x256xbf16>
      %c0_24 = arith.constant 0 : index
      %c0_25 = arith.constant 0 : index
      %35 = vector.load %arg9[%c0_24, %c0_25] : memref<64x256xbf16, #tpu.memory_space<vmem>>, vector<64x256xbf16>
      tpu.vector_store %arg9[%c0_24, %c0_25], %34 {strides = array<i32>} : memref<64x256xbf16, #tpu.memory_space<vmem>>, vector<64x256xbf16>,
    } else {
    }
    return
  }
  func.func @transform_0(%arg0: i32, %arg1: i32) -> (i32, i32) {
    %c0_i32 = arith.constant 0 : i32
    %c0_i32_0 = arith.constant 0 : i32
    return %arg0, %c0_i32 : i32, i32
  }
  func.func @transform_1(%arg0: i32, %arg1: i32) -> (i32, i32) {
    %c0_i32 = arith.constant 0 : i32
    %c0_i32_0 = arith.constant 0 : i32
    return %c0_i32, %arg1 : i32, i32
  }
  func.func @transform_2(%arg0: i32, %arg1: i32) -> (i32, i32) {
    %c0_i32 = arith.constant 0 : i32
    %c0_i32_0 = arith.constant 0 : i32
    return %c0_i32, %arg1 : i32, i32
  }
  func.func @transform_3(%arg0: i32, %arg1: i32) -> (i32, i32) {
    %c0_i32 = arith.constant 0 : i32
    %c0_i32_0 = arith.constant 0 : i32
    return %c0_i32, %arg1 : i32, i32
  }
  func.func @transform_4(%arg0: i32, %arg1: i32) -> (i32, i32) {
    %c0_i32 = arith.constant 0 : i32
    %c0_i32_0 = arith.constant 0 : i32
    return %c0_i32, %arg1 : i32, i32
  }
  func.func @transform_5(%arg0: i32, %arg1: i32) -> (i32, i32) {
    %c0_i32 = arith.constant 0 : i32
    %c0_i32_0 = arith.constant 0 : i32
    return %arg1, %c0_i32 : i32, i32
  }
  func.func @transform_6(%arg0: i32, %arg1: i32) -> (i32, i32) {
    %c0_i32 = arith.constant 0 : i32
    %c0_i32_0 = arith.constant 0 : i32
    %c0_i32_1 = arith.constant 0 : i32
    return %c0_i32, %c0_i32_0 : i32, i32
  }
  func.func @transform_7(%arg0: i32, %arg1: i32) -> (i32, i32) {
    %c0_i32 = arith.constant 0 : i32
    %c0_i32_0 = arith.constant 0 : i32
    return %arg0, %c0_i32 : i32, i32
  }
}

</mosaic_0001>

<bundles_post_ra>
// kernel: tpu_custom_call.1
= control target key start
LH: loop header
LB: loop body
LE: loop exit
PB: predicated region body
PF: predicated region fallthrough
CT: control target
= control target key end

     0   :  { %s2683_s0 = inlined_call_operand.hbm [shape: bf16[128,256], index: 0, kind: input, shape index: {}]   ;;  %s2684_s1 = inlined_call_operand.hbm [shape: bf16[256,256], index: 1, kind: input, shape index: {}]   ;;  %s2685_s2 = inlined_call_operand.vmem [shape: f32[1,256], index: 2, kind: input, shape index: {}]   ;;  %s2686_s3 = inlined_call_operand.hbm [shape: bf16[256,256], index: 3, kind: input, shape index: {}]   ;;  %s2687_s4 = inlined_call_operand.vmem [shape: f32[1,256], index: 4, kind: input, shape index: {}]   ;;  %s2688_s5 = inlined_call_operand.hbm [shape: bf16[256,256], index: 5, kind: input, shape index: {}]   ;;  %s2689_s6 = inlined_call_operand.vmem [shape: f32[1,256], index: 6, kind: input, shape index: {}]   ;;  %s2690_s7 = inlined_call_operand.hbm [shape: bf16[128,256], index: 7, kind: output, shape index: {}]  }
   0x1   :  { %2708 = sst [smem:[#allocation25_spill]] %s2683_s0 }
   0x2   :  { %2709 = sst [smem:[#allocation26_spill]] %s2684_s1 }
   0x3   :  { %2710 = sst [smem:[#allocation27_spill]] %s2685_s2 }
   0x4   :  { %2711 = sst [smem:[#allocation28_spill]] %s2686_s3 }
   0x5   :  { %2712 = sst [smem:[#allocation29_spill]] %s2687_s4 }
   0x6   :  { %2713 = sst [smem:[#allocation30_spill]] %s2689_s6 }
   0x7   :  { %2714 = sst [smem:[#allocation31_spill]] %s2690_s7 }
   0x8   :  { %12 = vsyncpa [#allocation4], 0 }
   0x9   :  { %14 = vsyncpa [#allocation4 + $0x1], 0 }
   0xa   :  { %15 = vsyncpa [#allocation7], 0 }
   0xb   :  { %17 = vsyncpa [#allocation7 + $0x1], 0 }
   0xc   :  { %18 = vsyncpa [#allocation10], 0 }
   0xd   :  { %20 = vsyncpa [#allocation10 + $0x1], 0 }
   0xe   :  { %21 = vsyncpa [#allocation5], 0 }
   0xf   :  { %23 = vsyncpa [#allocation5 + $0x1], 0  ;;  %s2232_s24 = smov 0   ;;  %s2234_s25 = smov 0  }
  0x10   :  { %s2236_s26 = smov 0   ;;  %s2238_s27 = smov 0  }
  0x11   :  { %s2240_s28 = smov 0   ;;  %s2242_s29 = smov 0  }
  0x12   :  { %s2244_s30 = smov 0   ;;  %s2246_s8 = smov 0  }
  0x13   :  { %s2248_s9 = smov 0   ;;  %s2250_s10 = smov 0  }
  0x14   :  { %s2252_s11 = smov 0  }
  0x15 LB: > { %2715 = sst [smem:[#allocation16_spill]] %s2157_s29  ;;  %s38_s12 = sadd.s32 1, %s2169_s9  ;;  %s2177_s11 = sphi %s2252_s11, %s29_s11   ;;  %s2173_s10 = sphi %s2250_s10, %s2763_s10   ;;  %s2169_s9 = sphi %s2248_s9, %s2770_s9   ;;  %s2165_s8 = sphi %s2246_s8, %s2761_s8   ;;  %s2161_s30 = sphi %s2244_s30, %s2769_s30   ;;  %s2157_s29 = sphi %s2242_s29, %s2760_s29   ;;  %s2153_s28 = sphi %s2240_s28, %s2768_s28   ;;  %s2149_s27 = sphi %s2238_s27, %s2767_s27   ;;  %s2145_s26 = sphi %s2236_s26, %s2766_s26   ;;  %s2141_s25 = sphi %s2234_s25, %s2765_s25   ;;  %s2137_s24 = sphi %s2232_s24, %s2764_s24  }
  0x16   : > { %2716 = sst [smem:[#allocation17_spill]] %s2161_s30  ;;  %p56_p0 = scmp.eq.s32.totalorder %s2177_s11, 0 }
  0x17   : > { %2717 = sst [smem:[#allocation18_spill]] %s2165_s8  ;;  %p2289_p1 = scmp.ge.s32.totalorder %s38_s12, 2 }
  0x18   : > { %2718 = sst [smem:[#allocation19_spill]] %s2173_s10  ;;  %s74_s14 = sadd.s32 1, %s2145_s26 }
  0x19   : > { %p81_p2 = scmp.ne.s32.totalorder %s2145_s26, %s2141_s25  ;;  %p87_p3 = scmp.ne.s32.totalorder %s2141_s25, %s2137_s24 }
  0x1a   : > { %s2772_s12 = smov (%p2289_p1, %s38_s12), 0  ;;  %p2696_p5 = scmp.lt.s32.totalorder %s2177_s11, 4 }
  0x1b   : > { %2720 = sst [smem:[#allocation20_spill]] %s2772_s12  ;;  %p2304_p4 = por %p81_p2, %p56_p0 }
  0x1c   : > { %s71_s16 = ssub.s32 %s2169_s9, %s2772_s12  ;;  %s287_s17 = sand.u32 1, %s2177_s11  }
  0x1d   : > { %p72_p6 = scmp.eq.s32.totalorder %s71_s16, 0  ;;  %s2693_s18 = sand.u32 1, %s2145_s26  }
  0x1e   : > { %s2318_s20 = sshll.u32 %s2693_s18, 7  ;;  %s1507_s21 = sshll.u32 %s2169_s9, 6 }
  0x1f   : > { %s2314_s19 = scalar_select %p72_p6, %s2145_s26, %s74_s14  }
  0x20   : > { %s2723_s1 = sld [smem:[#allocation26_spill]]  ;;  %s291_s8 = scalar_lea.vmem [#allocation6], %s2318_s20 }
  0x21   : > { %2722 = sst [smem:[#allocation21_spill]] %s2314_s19  ;;  %s297_s6 = sshll.u32 %s291_s8, 4  ;;  %s298_s6 = int_to_ptr.vmem [resolvable:$true] %s297_s6 }
  0x22   : > { %p2329_p7 = pnand %p2696_p5, %p2304_p4  ;;  %s2725_s3 = sld [smem:[#allocation28_spill]] }
  0x23   : > { %s2338_s19 = scalar_lea.sflag [#allocation7], %s287_s17  ;;  %s1950_s22 = scalar_lea.vmem %s298_s6, 2048 }
  0x24   : > { %p2695_p8 = pneg %p2329_p7  ;;  %p1951_p9 = scmp.ne.s32.totalorder %s298_s6, %s1950_s22 }
  0x25   : > { %s2179_s8 = smov [#allocation6]  }
  0x26   : > { %s296_s7 = scalar_lea.hbm %s2723_s1, %s1507_s21  ;;  %p1953_p10 = pnand %p1951_p9, %p2695_p8 }
  0x27   : > { %s1955_s15 = sshll.u32 %s2179_s8, 4  ;;  %s1956_s15 = int_to_ptr.vmem [resolvable:$false] %s1955_s15 }
  0x28   : > { %s2336_s18 = scalar_lea.hbm %s2725_s3, %s1507_s21  ;;  %p1954_p11 = pneg %p1953_p10 }
  0x29   : > { %s1957_s23 = scalar_lea.vmem %s1956_s15, 4096  ;;  %p1958_p12 = scmp.lt.s32.totalorder %s298_s6, %s1956_s15 }
  0x2a   : > { %p1959_p13 = scmp.lt.s32.totalorder %s1957_s23, %s1950_s22 }
  0x2c   : > { %p1960_p2 = por %p1959_p13, %p1958_p12 }
  0x2e   : > { %p1961_p4 = pnand %p1960_p2, %p1954_p11 }
  0x30   : > { %1964 = shalt.err (!%p1961_p4)
}
  0x31   : > { %s2698_s12 = smov 128   ;;  %s2694_s17 = smov 64  }
  0x32   : > { %s2697_s21 = smov 4   ;;  %p1514_p6 = scmp.ge.s32.totalorder %s2177_s11, 1 }
  0x33   : > { %1728 = dma.hbm_to_vmem [thread:$0]  (!%p2329_p7), %s296_s7, 2048, %s298_s6, %s2338_s19, %s2698_s12, %s2694_s17, %s2697_s21  }
  0x34   : > { %p359_p9 = scmp.lt.s32.totalorder %s2177_s11, 5  ;;  %s2358_s22 = sadd.s32 4294967295, %s2177_s11  }
  0x35   : > { %s1499_s8 = sadd.s32 4294967294, %s2177_s11   ;;  %s41_s15 = sadd.s32 1, %s2173_s10 }
  0x36   : > { %p2353_p10 = pnand %p1514_p6, %p359_p9  ;;  %s2774_s15 = smov (!%p2289_p1, %s41_s15), %s2173_s10 }
  0x37   : > { %s48_s6 = sadd.s32 1, %s2157_s29  ;;  %p55_p11 = scmp.ne.s32.totalorder %s2157_s29, %s2153_s28 }
  0x38   : > { %p43_p12 = scmp.ge.s32.totalorder %s2774_s15, 2  ;;  %p61_p13 = scmp.ne.s32.totalorder %s2153_s28, %s2149_s27 }
  0x39   : > { %p2372_p2 = por %p56_p0, %p55_p11  ;;  %p62_p4 = scmp.eq.s32.totalorder %s2358_s22, 0 }
  0x3a   : > { %s2776_s15 = smov (%p43_p12, %s2774_s15), 0  ;;  %p236_p0 = scmp.eq.s32.totalorder %s2358_s22, 3 }
  0x3b   : > { %2728 = sst [smem:[#allocation22_spill]] %s2776_s15  ;;  %p2382_p1 = por %p62_p4, %p61_p13 }
  0x3c   : > { %p2389_p6 = por %p87_p3, %p62_p4  ;;  %s45_s17 = ssub.s32 %s2173_s10, %s2776_s15 }
  0x3d   : > { %p46_p9 = scmp.eq.s32.totalorder %s45_s17, 0  ;;  %p242_p8 = scmp.eq.s32.totalorder %s1499_s8, 3 }
  0x3e   : > { %p2396_p5 = por %p236_p0, %p55_p11  ;;  %s265_s12 = sand.u32 1, %s2157_s29  }
  0x3f   : > { %s2402_s1 = scalar_select %p46_p9, %s2157_s29, %s48_s6  }
  0x40   : > { %s2731_s21 = scalar_select %p2396_p5, 1, 0 }
  0x41   : > { %2733 = sst [smem:[#allocation24_spill]] %s2402_s1  ;;  %p2407_p12 = por %p242_p8, %p61_p13 }
  0x42   : > { %2732 = sst [smem:[#allocation23_spill]] %s2731_s21  ;;  %s1502_s24 = sshll.u32 %s265_s12, 6 }
  0x43   : > { %s2734_s3 = scalar_select %p2407_p12, 1, 0 }
  0x44   : > { %s1603_s4 = sshll.u32 %s2173_s10, 10  ;;  %s2735_s0 = sld [smem:[#allocation25_spill]] }
  0x45   : > { %s269_s17 = scalar_lea.vmem [#allocation3], %s1502_s24  ;;  %p2736_p3 = scmp.lt.s32.totalorder %s2177_s11, 4 }
  0x46   : > { %s277_s8 = sshll.u32 %s269_s17, 4  ;;  %s266_s6 = scalar_lea.sflag [#allocation4], %s265_s12  ;;  %s278_s8 = int_to_ptr.vmem [resolvable:$true] %s277_s8 }
  0x47   : > { %p2419_p11 = pnand %p2736_p3, %p2372_p2  ;;  %s1978_s1 = scalar_lea.vmem %s278_s8, 1024 }
  0x48   : > { %p1979_p13 = scmp.ne.s32.totalorder %s278_s8, %s1978_s1  ;;  %s2183_s10 = smov [#allocation3]  }
  0x49   : > { %p1967_p8 = pneg %p2419_p11  ;;  %s1983_s2 = sshll.u32 %s2183_s10, 4  ;;  %s1984_s2 = int_to_ptr.vmem [resolvable:$false] %s1983_s2 }
  0x4a   : > { %s276_s15 = scalar_lea.hbm %s2735_s0, %s1603_s4  ;;  %s1985_s4 = scalar_lea.vmem %s1984_s2, 2048 }
  0x4b   : > { %p1981_p4 = pnand %p1979_p13, %p1967_p8  ;;  %p1986_p9 = scmp.lt.s32.totalorder %s278_s8, %s1984_s2 }
  0x4c   : > { %p1987_p12 = scmp.lt.s32.totalorder %s1985_s4, %s1978_s1 }
  0x4d   : > { %p1982_p0 = pneg %p1981_p4 }
  0x4e   : > { %p1988_p5 = por %p1987_p12, %p1986_p9 }
  0x50   : > { %p1989_p2 = pnand %p1988_p5, %p1982_p0 }
  0x52   : > { %1992 = shalt.err (!%p1989_p2)
}
  0x53   : > { %s2706_s30 = smov 8   ;;  %s2738_s12 = smov 128  }
  0x54   : > { %1725 = dma.hbm_to_vmem [thread:$0]  (!%p2419_p11), %s276_s15, 1024, %s278_s8, %s266_s6, %s2738_s12, %s2738_s12, %s2706_s30  }
  0x55   : > { %s317_s7 = scalar_lea.vmem [#allocation8], %s2318_s20  ;;  %p2739_p8 = pneg %p2329_p7 }
  0x56   : > { %s323_s24 = sshll.u32 %s317_s7, 4  ;;  %s2185_s1 = smov [#allocation8]   ;;  %s324_s24 = int_to_ptr.vmem [resolvable:$true] %s323_s24 }
  0x57   : > { %s2006_s10 = scalar_lea.vmem %s324_s24, 2048  ;;  %s2011_s17 = sshll.u32 %s2185_s1, 4  ;;  %s2012_s17 = int_to_ptr.vmem [resolvable:$false] %s2011_s17 }
  0x58   : > { %p2007_p3 = scmp.ne.s32.totalorder %s324_s24, %s2006_s10  ;;  %s2013_s2 = scalar_lea.vmem %s2012_s17, 4096 }
  0x59   : > { %p2014_p5 = scmp.lt.s32.totalorder %s324_s24, %s2012_s17  ;;  %p2015_p4 = scmp.lt.s32.totalorder %s2013_s2, %s2006_s10 }
  0x5a   : > { %p2009_p13 = pnand %p2007_p3, %p2739_p8 }
  0x5b   : > { %p2016_p0 = por %p2015_p4, %p2014_p5 }
  0x5c   : > { %p2010_p12 = pneg %p2009_p13 }
  0x5e   : > { %p2017_p9 = pnand %p2016_p0, %p2010_p12 }
  0x60   : > { %2020 = shalt.err (!%p2017_p9)
}
  0x61   : > { %s2740_s21 = smov 4   ;;  %s2741_s15 = smov 64  }
  0x62   : > { %1731 = dma.hbm_to_vmem [thread:$0]  (!%p2329_p7), %s2336_s18, 2048, %s324_s24, %s2338_s19, %s2738_s12, %s2741_s15, %s2740_s21  }
  0x63   : > { %s1605_s8 = sshll.u32 %s2169_s9, 11  ;;  %s343_s6 = scalar_lea.vmem [#allocation9], %s2318_s20 }
  0x64   : > { %s351_s4 = sshll.u32 %s343_s6, 4  ;;  %s350_s1 = scalar_lea.hbm %s2688_s5, %s1605_s8  ;;  %s352_s4 = int_to_ptr.vmem [resolvable:$true] %s351_s4 }
  0x65   : > { %s2742_s17 = sand.u32 1, %s2145_s26   ;;  %s2034_s30 = scalar_lea.vmem %s352_s4, 2048 }
  0x66   : > { %s340_s2 = scalar_lea.sflag [#allocation10], %s2742_s17  ;;  %p2035_p11 = scmp.ne.s32.totalorder %s352_s4, %s2034_s30 }
  0x67   : > { %p2743_p2 = pmov %p2739_p8  ;;  %s2186_s0 = smov [#allocation9]  }
  0x68   : > { %s2039_s29 = sshll.u32 %s2186_s0, 4  ;;  %s2040_s29 = int_to_ptr.vmem [resolvable:$false] %s2039_s29 }
  0x69   : > { %p2037_p3 = pnand %p2035_p11, %p2743_p2  ;;  %s2041_s18 = scalar_lea.vmem %s2040_s29, 4096 }
  0x6a   : > { %p2042_p13 = scmp.lt.s32.totalorder %s352_s4, %s2040_s29  ;;  %p2043_p12 = scmp.lt.s32.totalorder %s2041_s18, %s2034_s30 }
  0x6b   : > { %p2038_p8 = pneg %p2037_p3 }
  0x6c   : > { %p2044_p5 = por %p2043_p12, %p2042_p13 }
  0x6e   : > { %p2045_p4 = pnand %p2044_p5, %p2038_p8 }
  0x70   : > { %2048 = shalt.err (!%p2045_p4)
}
  0x71   : > { %s2744_s19 = smov 8   ;;  %363 = sbr.rel (%p2353_p10) target bundleno = 696 (0x2b8), region = 48 }
  0x72   : > { %1734 = dma.hbm_to_vmem [thread:$0]  (!%p2329_p7), %s350_s1, 2048, %s352_s4, %s340_s2, %s2738_s12, %s2738_s12, %s2744_s19  }
  0x73   : > { %s2459_s20 = sand.u32 (!%p2353_p10), 1, %s2153_s28  }
  0x74   : > { %s1515_s0 = sshll.u32 (!%p2353_p10), %s2459_s20, 6  ;;  %s366_s29 = scalar_lea.sflag (!%p2353_p10), [#allocation4], %s2459_s20 }
  0x75   : > { %s2463_s30 = scalar_lea.vmem (!%p2353_p10), [#allocation3], %s1515_s0 }
  0x76   : > { %2120 = dma.done.wait (%p2382_p1), %s366_s29, 1024  }
  0x77   : > { %2122 = vsyncadd (%p2382_p1), %s366_s29, 4294966272  ;;  %s374_s16 = sand.u32 1, %s2358_s22   ;;  %s376_s14 = sand.u32 1, %s2141_s25  }
  0x78   : > { %s1516_s12 = sshll.u32 %s376_s14, 7  ;;  %s375_s24 = scalar_lea.sflag [#allocation7], %s374_s16 }
  0x79   : > { %s2471_s21 = scalar_lea.vmem [#allocation6], %s1516_s12 }
  0x7a   : > { %2124 = dma.done.wait (%p2389_p6), %s375_s24, 4096  }
  0x7b   : > { %2126 = vsyncadd (%p2389_p6), %s375_s24, 4294963200  ;;  %s2477_s15 = scalar_lea.vmem [#allocation8], %s1516_s12  ;;  %s393_s8 = scalar_lea.sflag [#allocation10], %s376_s14 }
  0x7c   : > { %s2479_s13 = scalar_lea.vmem [#allocation9], %s1516_s12 }
  0x7d   : > { %2128 = dma.done.wait (%p2389_p6), %s393_s8, 2048  }
  0x7e   : > { %2130 = vsyncadd (%p2389_p6), %s393_s8, 4294965248  ;;  %s2745_s22 = sld [smem:[#allocation17_spill]]  ;;  %s2497_s29 = scalar_lea.vmem [#allocation11], %s1515_s0 }
  0x7f   : > { %s2746_s10 = sld [smem:[#allocation27_spill]] }
  0x80   : > { %s2747_s18 = sld [smem:[#allocation29_spill]] }
  0x84   : > { %p449_p7 = scmp.lt.s32.totalorder %s2745_s22, 1  ;;  %p1520_p10 = scmp.ne.s32.totalorder %s2745_s22, 0 }
  0x86   : > { %s2487_s6 = scalar_select %p449_p7, %s2745_s22, 1 }
  0x87   : > { %461 = sbr.rel (%p1520_p10) target bundleno = 149 (0x95), region = 68 }
  0x88   : > { %s451_s1 = scalar_lea.vmem %s2746_s10, %s2487_s6  ;;  %s454_s19 = scalar_lea.vmem %s2747_s18, %s2487_s6 }
  0x8c   : > { %v2187_v0 = vmov 0.0  }
  0x8d   : > { %462 = vst [vmem:[#allocation2 + $0x30] sm:$0xff] %v2187_v0  ;;  %463 = vst [vmem:[#allocation2] sm:$0xff] %v2187_v0 }
  0x8e   : > { %464 = vst [vmem:[#allocation2 + $0x58] sm:$0xff] %v2187_v0  ;;  %465 = vst [vmem:[#allocation2 + $0x18] sm:$0xff] %v2187_v0 }
  0x8f   : > { %466 = vst [vmem:[#allocation2 + $0x50] sm:$0xff] %v2187_v0  ;;  %467 = vst [vmem:[#allocation2 + $0x68] sm:$0xff] %v2187_v0 }
  0x90   : > { %468 = vst [vmem:[#allocation2 + $0x8] sm:$0xff] %v2187_v0  ;;  %469 = vst [vmem:[#allocation2 + $0x48] sm:$0xff] %v2187_v0 }
  0x91   : > { %470 = vst [vmem:[#allocation2 + $0x40] sm:$0xff] %v2187_v0  ;;  %471 = vst [vmem:[#allocation2 + $0x20] sm:$0xff] %v2187_v0 }
  0x92   : > { %472 = vst [vmem:[#allocation2 + $0x10] sm:$0xff] %v2187_v0  ;;  %473 = vst [vmem:[#allocation2 + $0x38] sm:$0xff] %v2187_v0 }
  0x93   : > { %474 = vst [vmem:[#allocation2 + $0x60] sm:$0xff] %v2187_v0  ;;  %475 = vst [vmem:[#allocation2 + $0x70] sm:$0xff] %v2187_v0 }
  0x94   : > { %476 = vst [vmem:[#allocation2 + $0x78] sm:$0xff] %v2187_v0  ;;  %477 = vst [vmem:[#allocation2 + $0x28] sm:$0xff] %v2187_v0 }
  0x95 PF: > { %v1837_v1 = vld [vmem:[%s2471_s21 + $0x78] sm:$0xff]   ;;  %v1839_v3 = vld [vmem:[%s2471_s21 + $0x70] sm:$0xff]   ;;  %v1841_v5 = vld [vmem:[%s2471_s21 + $0x68] sm:$0xff]   ;;  %v2188_v57 = vmov 0   ;;  %s2750_s24 = sld [smem:[#allocation17_spill]] }
  0x96   : > { %v1838_v2 = vld [vmem:[%s2471_s21 + $0x38] sm:$0xff]   ;;  %1616 = vmatprep.subr.bf16.mxu0 %v1837_v1  ;;  %v1840_v4 = vld [vmem:[%s2471_s21 + $0x30] sm:$0xff]   ;;  %v1842_v6 = vld [vmem:[%s2471_s21 + $0x28] sm:$0xff]  }
  0x97   : > { %1617 = vmatpush3.bf16.msra.mxu0 %v1838_v2  ;;  %v1843_v7 = vld [vmem:[%s2471_s21 + $0x60] sm:$0xff]   ;;  %v1845_v9 = vld [vmem:[%s2471_s21 + $0x58] sm:$0xff]   ;;  %v1847_v12 = vld [vmem:[%s2471_s21 + $0x50] sm:$0xff]  }
  0x98   : > { %1618 = vmatprep.subr.bf16.mxu0 %v1839_v3  ;;  %v1844_v8 = vld [vmem:[%s2471_s21 + $0x20] sm:$0xff]   ;;  %v1846_v10 = vld [vmem:[%s2471_s21 + $0x18] sm:$0xff]   ;;  %v1848_v13 = vld [vmem:[%s2471_s21 + $0x10] sm:$0xff]  }
  0x99   : > { %v1852_v11 = vld [vmem:[%s2477_s15 + $0x78] sm:$0xff]   ;;  %v1849_v15 = vld [vmem:[%s2471_s21 + $0x48] sm:$0xff]   ;;  %v1858_v17 = vld [vmem:[%s2477_s15 + $0x70] sm:$0xff]  }
  0x9a   : > { %1656 = vmatprep.subr.bf16.mxu1 %v1852_v11  ;;  %v1854_v14 = vld [vmem:[%s2477_s15 + $0x38] sm:$0xff]   ;;  %v1857_v16 = vld [vmem:[%s2463_s30 + $0x4] ss:$8 sps:$4 sm:$0xff]   ;;  %v1859_v19 = vld [vmem:[%s2477_s15 + $0x30] sm:$0xff]  }
  0x9b   : > { %1619 = vmatpush3.bf16.msra.mxu0 %v1840_v4  ;;  %1657 = vmatpush3.bf16.msra.mxu1 %v1854_v14  ;;  %v1850_v18 = vld [vmem:[%s2471_s21 + $0x8] sm:$0xff]   ;;  %v1851_v22 = vld [vmem:[%s2471_s21 + $0x40] sm:$0xff]   ;;  %v1867_v26 = vld [vmem:[%s2477_s15 + $0x58] sm:$0xff]   ;;  %p1587_p1 = scmp.ne.s32.totalorder %s2750_s24, 1 }
  0x9c   : > { %1620 = vmatprep.subr.bf16.mxu0 %v1841_v5  ;;  %693 = vmatprep.mubr.bf16.mxu0 %v1857_v16  ;;  %v1860_v20 = vld [vmem:[%s2477_s15 + $0x68] sm:$0xff]   ;;  %v1865_v23 = vld [vmem:[%s2477_s15 + $0x60] sm:$0xff]   ;;  %v1862_v28 = vld [vmem:[%s2463_s30 + $0x14] ss:$8 sps:$4 sm:$0xff]   ;;  %s2751_s8 = sld [smem:[#allocation30_spill]] (!%p1587_p1) }
  0x9d   : > { %949 = vmatprep.mubr.bf16.mxu1 %v1857_v16  ;;  %1658 = vmatprep.subr.bf16.mxu1 %v1858_v17  ;;  %v1861_v21 = vld [vmem:[%s2477_s15 + $0x28] sm:$0xff]   ;;  %v1853_v24 = vld [vmem:[%s2471_s21] sm:$0xff]   ;;  %v1868_v29 = vld [vmem:[%s2477_s15 + $0x18] sm:$0xff]  }
  0x9e   : > { %v1866_v25 = vld [vmem:[%s2477_s15 + $0x20] sm:$0xff]   ;;  %v1872_v30 = vld [vmem:[%s2477_s15 + $0x50] sm:$0xff]   ;;  %v1874_v33 = vld [vmem:[%s2477_s15 + $0x48] sm:$0xff]  }
  0x9f   : > { %1621 = vmatpush3.bf16.msra.mxu0 %v1842_v6  ;;  %1659 = vmatpush3.bf16.msra.mxu1 %v1859_v19  ;;  %v1855_v27 = vld [vmem:[%s2463_s30] ss:$8 sps:$4 sm:$0xff]   ;;  %v1873_v31 = vld [vmem:[%s2477_s15 + $0x10] sm:$0xff]   ;;  %v1869_v34 = vld [vmem:[%s2463_s30 + $0x24] ss:$8 sps:$4 sm:$0xff]  }
  0xa0   : > { %1622 = vmatprep.subr.bf16.mxu0 %v1843_v7  ;;  %1660 = vmatprep.subr.bf16.mxu1 %v1860_v20  ;;  %v1864_v32 = vld [vmem:[%s2463_s30 + $0x10] ss:$8 sps:$4 sm:$0xff]   ;;  %v1875_v35 = vld [vmem:[%s2477_s15 + $0x8] sm:$0xff]   ;;  %v1879_v36 = vld [vmem:[%s2477_s15 + $0x40] sm:$0xff]  }
  0xa1   : > { %v1880_v37 = vld [vmem:[%s2477_s15] sm:$0xff]   ;;  %v1876_v39 = vld [vmem:[%s2463_s30 + $0x34] ss:$8 sps:$4 sm:$0xff]   ;;  %v1878_v40 = vld [vmem:[%s2463_s30 + $0x30] ss:$8 sps:$4 sm:$0xff]  }
  0xa2   : > { %v1871_v38 = vld [vmem:[%s2463_s30 + $0x20] ss:$8 sps:$4 sm:$0xff]   ;;  %v1883_v41 = vld [vmem:[%s2479_s13 + $0x74] ss:$8 sps:$4 sm:$0xff]   ;;  %v1881_v42 = vld [vmem:[%s2479_s13 + $0x70] ss:$8 sps:$4 sm:$0xff]  }
  0xa3   : > { %1623 = vmatpush3.bf16.msra.mxu0 %v1844_v8  ;;  %1661 = vmatpush3.bf16.msra.mxu1 %v1861_v21  ;;  %v1886_v43 = vld [vmem:[%s2479_s13 + $0x64] ss:$8 sps:$4 sm:$0xff]   ;;  %v1884_v44 = vld [vmem:[%s2479_s13 + $0x60] ss:$8 sps:$4 sm:$0xff]   ;;  %v1889_v45 = vld [vmem:[%s2479_s13 + $0x54] ss:$8 sps:$4 sm:$0xff]  }
  0xa4   : > { %1624 = vmatprep.subr.bf16.mxu0 %v1845_v9  ;;  %1662 = vmatprep.subr.bf16.mxu1 %v1865_v23  ;;  %v1887_v46 = vld [vmem:[%s2479_s13 + $0x50] ss:$8 sps:$4 sm:$0xff]   ;;  %v1892_v47 = vld [vmem:[%s2479_s13 + $0x44] ss:$8 sps:$4 sm:$0xff]   ;;  %v1890_v48 = vld [vmem:[%s2479_s13 + $0x40] ss:$8 sps:$4 sm:$0xff]  }
  0xa5   : > { %v1895_v49 = vld [vmem:[%s2479_s13 + $0x34] ss:$8 sps:$4 sm:$0xff]   ;;  %v1893_v50 = vld [vmem:[%s2479_s13 + $0x30] ss:$8 sps:$4 sm:$0xff]   ;;  %v1898_v51 = vld [vmem:[%s2479_s13 + $0x24] ss:$8 sps:$4 sm:$0xff]  }
  0xa6   : > { %v1896_v52 = vld [vmem:[%s2479_s13 + $0x20] ss:$8 sps:$4 sm:$0xff]   ;;  %v1901_v53 = vld [vmem:[%s2479_s13 + $0x14] ss:$8 sps:$4 sm:$0xff]   ;;  %v1899_v54 = vld [vmem:[%s2479_s13 + $0x10] ss:$8 sps:$4 sm:$0xff]  }
  0xa7   : > { %1625 = vmatpush3.bf16.msra.mxu0 %v1846_v10  ;;  %1663 = vmatpush3.bf16.msra.mxu1 %v1866_v25  ;;  %v1904_v55 = vld [vmem:[%s2479_s13 + $0x4] ss:$8 sps:$4 sm:$0xff]   ;;  %v1902_v56 = vld [vmem:[%s2479_s13] ss:$8 sps:$4 sm:$0xff]  }
  0xa8   : > { %1626 = vmatprep.subr.bf16.mxu0 %v1847_v12  ;;  %1664 = vmatprep.subr.bf16.mxu1 %v1867_v26  ;;  %v1521_v59 = vld [vmem:[%s451_s1] ss:$0 sm:$0xff] }
  0xab   : > { %1627 = vmatpush3.bf16.msra.mxu0 %v1848_v13  ;;  %1665 = vmatpush3.bf16.msra.mxu1 %v1868_v29 }
  0xac   : > { %1628 = vmatprep.subr.bf16.mxu0 %v1849_v15  ;;  %1666 = vmatprep.subr.bf16.mxu1 %v1872_v30 }
  0xaf   : > { %1629 = vmatpush3.bf16.msra.mxu0 %v1850_v18  ;;  %1667 = vmatpush3.bf16.msra.mxu1 %v1873_v31 }
  0xb0   : > { %1630 = vmatprep.subr.bf16.mxu0 %v1851_v22  ;;  %1668 = vmatprep.subr.bf16.mxu1 %v1874_v33 }
  0xb3   : > { %1631 = vmatpush3.bf16.msra.mxu0 %v1853_v24  ;;  %1669 = vmatpush3.bf16.msra.mxu1 %v1875_v35 }
  0xb4   : > { %1670 = vmatprep.subr.bf16.mxu1 %v1879_v36  ;;  %1106 = vmatprep.subr.bf16.mxu0 %v1883_v41 }
  0xb6   : > { %694 = vmatmul.mubr.bf16.vlgmr.msra.gmra.mxu0 %v1855_v27 }
  0xb7   : > { %701 = vmatprep.mubr.bf16.mxu0 %v1862_v28  ;;  %1671 = vmatpush3.bf16.msra.mxu1 %v1880_v37 }
  0xb8   : > { %1696 = vmatprep.subr.bf16.mxu1 %v1883_v41  ;;  %1107 = vmatpush1.bf16.msra.mxu0 %v1881_v42 }
  0xb9   : > { %1108 = vmatprep.subr.bf16.mxu0 %v1886_v43 }
  0xba   : > { %950 = vmatmul.mubr.bf16.vlgmr.msra.gmra.mxu1 %v1855_v27 }
  0xbb   : > { %957 = vmatprep.mubr.bf16.mxu1 %v1862_v28  ;;  %1704 = vmatpush1.bf16.msra.mxu1 %v1881_v42 }
  0xbc   : > { %1697 = vmatprep.subr.bf16.mxu1 %v1886_v43  ;;  %1109 = vmatpush1.bf16.msra.mxu0 %v1884_v44 }
  0xbd   : > { %1110 = vmatprep.subr.bf16.mxu0 %v1889_v45 }
  0xbe   : > { %702 = vmatmul.mubr.bf16.gmra.mxu0 %v1864_v32 }
  0xbf   : > { %709 = vmatprep.mubr.bf16.mxu0 %v1869_v34  ;;  %1705 = vmatpush1.bf16.msra.mxu1 %v1884_v44 }
  0xc0   : > { %1698 = vmatprep.subr.bf16.mxu1 %v1889_v45  ;;  %1111 = vmatpush1.bf16.msra.mxu0 %v1887_v46 }
  0xc1   : > { %1112 = vmatprep.subr.bf16.mxu0 %v1892_v47 }
  0xc2   : > { %958 = vmatmul.mubr.bf16.gmra.mxu1 %v1864_v32 }
  0xc3   : > { %965 = vmatprep.mubr.bf16.mxu1 %v1869_v34  ;;  %1706 = vmatpush1.bf16.msra.mxu1 %v1887_v46 }
  0xc4   : > { %1699 = vmatprep.subr.bf16.mxu1 %v1892_v47  ;;  %1113 = vmatpush1.bf16.msra.mxu0 %v1890_v48 }
  0xc5   : > { %1114 = vmatprep.subr.bf16.mxu0 %v1895_v49 }
  0xc6   : > { %710 = vmatmul.mubr.bf16.gmra.mxu0 %v1871_v38 }
  0xc7   : > { %717 = vmatprep.mubr.bf16.mxu0 %v1876_v39  ;;  %1707 = vmatpush1.bf16.msra.mxu1 %v1890_v48 }
  0xc8   : > { %1700 = vmatprep.subr.bf16.mxu1 %v1895_v49  ;;  %1115 = vmatpush1.bf16.msra.mxu0 %v1893_v50 }
  0xc9   : > { %1116 = vmatprep.subr.bf16.mxu0 %v1898_v51 }
  0xca   : > { %966 = vmatmul.mubr.bf16.gmra.mxu1 %v1871_v38 }
  0xcb   : > { %973 = vmatprep.mubr.bf16.mxu1 %v1876_v39  ;;  %1708 = vmatpush1.bf16.msra.mxu1 %v1893_v50 }
  0xcc   : > { %1701 = vmatprep.subr.bf16.mxu1 %v1898_v51  ;;  %1117 = vmatpush1.bf16.msra.mxu0 %v1896_v52 }
  0xcd   : > { %1118 = vmatprep.subr.bf16.mxu0 %v1901_v53 }
  0xce   : > { %718 = vmatmul.mubr.bf16.gmra.mxu0 %v1878_v40 }
  0xcf   : > { %1709 = vmatpush1.bf16.msra.mxu1 %v1896_v52  ;;  %1138 = vmatprep.mubr.bf16.mxu0 %v2188_v57 }
  0xd0   : > { %1702 = vmatprep.subr.bf16.mxu1 %v1901_v53  ;;  %1119 = vmatpush1.bf16.msra.mxu0 %v1899_v54 }
  0xd1   : > { %1120 = vmatprep.subr.bf16.mxu0 %v1904_v55 }
  0xd2   : > { %974 = vmatmul.mubr.bf16.gmra.mxu1 %v1878_v40 }
  0xd3   : > { %1710 = vmatpush1.bf16.msra.mxu1 %v1899_v54  ;;  %1158 = vmatprep.mubr.bf16.mxu1 %v2188_v57 }
  0xd4   : > { %1703 = vmatprep.subr.bf16.mxu1 %v1904_v55  ;;  %1121 = vmatpush1.bf16.msra.mxu0 %v1902_v56 }
  0xd7   : > { %1711 = vmatpush1.bf16.msra.mxu1 %v1902_v56 }
 0x176   : > { %v1632_v58 = vpop.f32.mrf.mxu0 }
 0x178   : > { %v1633_v60 = vpop.f32.mrf.mxu0 }
 0x179   : > { %v1634_v61 = vadd.f32 %v1633_v60, %v1632_v58 }
 0x17a   : > { %v1635_v62 = vpop.f32.mrf.mxu0  ;;  %v1672_v14 = vpop.f32.mrf.mxu1 }
 0x17b   : > { %v2563_v63 = vadd.f32 %v1634_v61, %v1521_v59 }
 0x17c   : > { %v1636_v0 = vpop.f32.mrf.mxu0  ;;  %v1673_v17 = vpop.f32.mrf.mxu1 }
 0x17d   : > { %v1546_v1 = vmul.f32 -1.442695, %v2563_v63  ;;  %v1637_v2 = vadd.f32 %v1636_v0, %v1635_v62  ;;  %v1674_v55 = vadd.f32 %v1673_v17, %v1672_v14 }
 0x17e   : > { %v1638_v3 = vpop.f32.mrf.mxu0  ;;  %v1675_v21 = vpop.f32.mrf.mxu1 }
 0x17f   : > { %1905 = vpow2.f32 %v1546_v1  ;;  %v2566_v4 = vadd.f32 %v1637_v2, %v1521_v59 }
 0x180   : > { %v1639_v5 = vpop.f32.mrf.mxu0  ;;  %v1676_v25 = vpop.f32.mrf.mxu1 }
 0x181   : > { %v1547_v6 = vmul.f32 -1.442695, %v2566_v4  ;;  %v1640_v7 = vadd.f32 %v1639_v5, %v1638_v3  ;;  %v1677_v56 = vadd.f32 %v1676_v25, %v1675_v21 }
 0x182   : > { %v1641_v8 = vpop.f32.mrf.mxu0  ;;  %v1678_v30 = vpop.f32.mrf.mxu1 }
 0x183   : > { %1907 = vpow2.f32 %v1547_v6  ;;  %v2569_v9 = vadd.f32 %v1640_v7, %v1521_v59 }
 0x184   : > { %v1642_v10 = vpop.f32.mrf.mxu0  ;;  %v1679_v34 = vpop.f32.mrf.mxu1 }
 0x185   : > { %v1548_v11 = vmul.f32 -1.442695, %v2569_v9  ;;  %v1643_v12 = vadd.f32 %v1642_v10, %v1641_v8 }
 0x186   : > { %v1644_v13 = vpop.f32.mrf.mxu0  ;;  %v1681_v39 = vpop.f32.mrf.mxu1 }
 0x187   : > { %1909 = vpow2.f32 %v1548_v11  ;;  %v2572_v15 = vadd.f32 %v1643_v12, %v1521_v59 }
 0x188   : > { %v1645_v16 = vpop.f32.mrf.mxu0  ;;  %v1682_v43 = vpop.f32.mrf.mxu1 }
 0x189   : > { %v1549_v18 = vmul.f32 -1.442695, %v2572_v15  ;;  %v1646_v19 = vadd.f32 %v1645_v16, %v1644_v13  ;;  %v1680_v13 = vadd.f32 %v1679_v34, %v1678_v30  ;;  %v1683_v14 = vadd.f32 %v1682_v43, %v1681_v39 }
 0x18a   : > { %v1647_v20 = vpop.f32.mrf.mxu0  ;;  %v1684_v48 = vpop.f32.mrf.mxu1 }
 0x18b   : > { %1911 = vpow2.f32 %v1549_v18  ;;  %v2575_v22 = vadd.f32 %v1646_v19, %v1521_v59 }
 0x18c   : > { %v1906_v23 = vpop.eup %1905  ;;  %v1648_v24 = vpop.f32.mrf.mxu0 }
 0x18d   : > { %v750_v26 = vadd.f32 1.0, %v1906_v23  ;;  %v1550_v27 = vmul.f32 -1.442695, %v2575_v22  ;;  %v1649_v28 = vadd.f32 %v1648_v24, %v1647_v20  ;;  %v1685_v52 = vpop.f32.mrf.mxu1 }
 0x18e   : > { %v1650_v29 = vpop.f32.mrf.mxu0 }
 0x18f   : > { %1913 = vrcp.f32 %v750_v26  ;;  %v2578_v31 = vadd.f32 %v1649_v28, %v1521_v59  ;;  %v1687_v61 = vpop.f32.mrf.mxu1 }
 0x190   : > { %v1908_v32 = vpop.eup %1907  ;;  %1915 = vpow2.f32 %v1550_v27  ;;  %v1651_v33 = vpop.f32.mrf.mxu0 }
 0x191   : > { %v751_v35 = vadd.f32 1.0, %v1908_v32  ;;  %v1551_v36 = vmul.f32 -1.442695, %v2578_v31  ;;  %v1652_v37 = vadd.f32 %v1651_v33, %v1650_v29  ;;  %v1688_v8 = vpop.f32.mrf.mxu1  ;;  %v1686_v29 = vadd.f32 %v1685_v52, %v1684_v48 }
 0x192   : > { %v1653_v38 = vpop.f32.mrf.mxu0 }
 0x193   : > { %1917 = vrcp.f32 %v751_v35  ;;  %v2581_v40 = vadd.f32 %v1652_v37, %v1521_v59  ;;  %v1690_v17 = vpop.f32.mrf.mxu1 }
 0x194   : > { %v1910_v41 = vpop.eup %1909  ;;  %1919 = vpow2.f32 %v1551_v36  ;;  %v1654_v42 = vpop.f32.mrf.mxu0 }
 0x195   : > { %v752_v44 = vadd.f32 1.0, %v1910_v41  ;;  %v1552_v45 = vmul.f32 -1.442695, %v2581_v40  ;;  %v1655_v46 = vadd.f32 %v1654_v42, %v1653_v38  ;;  %v1691_v26 = vpop.f32.mrf.mxu1 }
 0x196   : > { %v1692_v42 = vadd.f32 %v1691_v26, %v1690_v17  ;;  %v1000_v17 = vld [vmem:[#allocation2 + $0x10] sm:$0xff] }
 0x197   : > { %1921 = vrcp.f32 %v752_v44  ;;  %v2584_v47 = vadd.f32 %v1655_v46, %v1521_v59  ;;  %v1554_v59 = vld [vmem:[%s454_s19] ss:$0 sm:$0xff]  ;;  %v1693_v30 = vpop.f32.mrf.mxu1  ;;  %v1003_v26 = vld [vmem:[#allocation2 + $0x70] sm:$0xff] }
 0x198   : > { %v1912_v49 = vpop.eup %1911  ;;  %1923 = vpow2.f32 %v1552_v45  ;;  %v952_v2 = vadd.f32 %v1674_v55, %v1554_v59  ;;  %v955_v3 = vadd.f32 %v1677_v56, %v1554_v59  ;;  %v960_v20 = vadd.f32 %v1680_v13, %v1554_v59  ;;  %v992_v56 = vld [vmem:[#allocation2 + $0x58] sm:$0xff] }
 0x199   : > { %v753_v50 = vadd.f32 1.0, %v1912_v49  ;;  %v1553_v51 = vmul.f32 -1.442695, %v2584_v47  ;;  %v963_v21 = vadd.f32 %v1683_v14, %v1554_v59  ;;  %v968_v35 = vadd.f32 %v1686_v29, %v1554_v59  ;;  %v1694_v36 = vpop.f32.mrf.mxu1  ;;  %v999_v14 = vld [vmem:[#allocation2 + $0x20] sm:$0xff]  ;;  %v1004_v29 = vld [vmem:[#allocation2 + $0x78] sm:$0xff] }
 0x19a   : > { %v1695_v43 = vadd.f32 %v1694_v36, %v1693_v30  ;;  %v976_v46 = vadd.f32 %v1692_v42, %v1554_v59 }
 0x19b   : > { %1925 = vrcp.f32 %v753_v50 }
 0x19c   : > { %v1914_v53 = vpop.eup %1913  ;;  %1927 = vpow2.f32 %v1553_v51  ;;  %v979_v48 = vadd.f32 %v1695_v43, %v1554_v59  ;;  %v990_v51 = vld [vmem:[#allocation2 + $0x30] sm:$0xff] }
 0x19d   : > { %v1916_v54 = vpop.eup %1915  ;;  %v774_v60 = vmul.f32 %v1914_v53, %v2563_v63  ;;  %v991_v53 = vld [vmem:[#allocation2] sm:$0xff] }
 0x19e   : > { %v754_v58 = vadd.f32 1.0, %v1916_v54 }
 0x19f   : > { %v982_v6 = vmul.f32 %v952_v2, %v774_v60  ;;  %v993_v60 = vld [vmem:[#allocation2 + $0x18] sm:$0xff] }
 0x1a0   : > { %v1918_v62 = vpop.eup %1917  ;;  %1929 = vrcp.f32 %v754_v58 }
 0x1a1   : > { %v1920_v0 = vpop.eup %1919  ;;  %v775_v1 = vmul.f32 %v1918_v62, %v2566_v4 }
 0x1a2   : > { %v755_v5 = vadd.f32 1.0, %v1920_v0  ;;  %v995_v0 = vld [vmem:[#allocation2 + $0x68] sm:$0xff] }
 0x1a3   : > { %v983_v7 = vmul.f32 %v955_v3, %v775_v1  ;;  %v996_v3 = vld [vmem:[#allocation2 + $0x8] sm:$0xff] }
 0x1a4   : > { %v1922_v10 = vpop.eup %1921  ;;  %1931 = vrcp.f32 %v755_v5 }
 0x1a5   : > { %v1924_v11 = vpop.eup %1923  ;;  %v1006_v12 = vpack.c.bf16 %v983_v7, %v982_v6  ;;  %v776_v63 = vmul.f32 %v1922_v10, %v2569_v9  ;;  %v1689_v9 = vadd.f32 %v1688_v8, %v1687_v61  ;;  %v997_v7 = vld [vmem:[#allocation2 + $0x48] sm:$0xff] }
 0x1a6   : > { %v756_v16 = vadd.f32 1.0, %v1924_v11 }
 0x1a7   : > { %1139 = vmatmul.mubr.bf16.vlgmr.msra.gmra.mxu0 %v1006_v12  ;;  %v984_v24 = vmul.f32 %v960_v20, %v776_v63  ;;  %v998_v12 = vld [vmem:[#allocation2 + $0x40] sm:$0xff] }
 0x1a8   : > { %v1926_v18 = vpop.eup %1925  ;;  %1933 = vrcp.f32 %v756_v16  ;;  %1148 = vmatprep.mubr.bf16.mxu0 %v2188_v57 }
 0x1a9   : > { %v1928_v4 = vpop.eup %1927  ;;  %v777_v19 = vmul.f32 %v1926_v18, %v2572_v15  ;;  %v971_v15 = vadd.f32 %v1689_v9, %v1554_v59 }
 0x1aa   : > { %v757_v23 = vadd.f32 1.0, %v1928_v4 }
 0x1ab   : > { %v985_v25 = vmul.f32 %v963_v21, %v777_v19  ;;  %v1001_v19 = vld [vmem:[#allocation2 + $0x38] sm:$0xff] }
 0x1ac   : > { %1935 = vrcp.f32 %v757_v23  ;;  %v1002_v23 = vld [vmem:[#allocation2 + $0x60] sm:$0xff] }
 0x1ad   : > { %v1930_v27 = vpop.eup %1929  ;;  %v1007_v28 = vpack.c.bf16 %v985_v25, %v984_v24 }
 0x1ae   : > { %v778_v32 = vmul.f32 %v1930_v27, %v2575_v22 }
 0x1af   : > { %1149 = vmatmul.mubr.bf16.gmra.mxu0 %v1007_v28 }
 0x1b0   : > { %v986_v37 = vmul.f32 %v968_v35, %v778_v32  ;;  %v1005_v32 = vld [vmem:[#allocation2 + $0x28] sm:$0xff] }
 0x1b1   : > { %v1932_v33 = vpop.eup %1931 }
 0x1b2   : > { %v779_v34 = vmul.f32 %v1932_v33, %v2578_v31 }
 0x1b4   : > { %v987_v38 = vmul.f32 %v971_v15, %v779_v34 }
 0x1b5   : > { %v1934_v39 = vpop.eup %1933 }
 0x1b6   : > { %v1008_v41 = vpack.c.bf16 %v987_v38, %v986_v37  ;;  %v780_v44 = vmul.f32 %v1934_v39, %v2581_v40 }
 0x1b8   : > { %1159 = vmatmul.mubr.bf16.vlgmr.msra.gmra.mxu1 %v1008_v41  ;;  %v988_v31 = vmul.f32 %v976_v46, %v780_v44 }
 0x1b9   : > { %v1936_v45 = vpop.eup %1935  ;;  %1168 = vmatprep.mubr.bf16.mxu1 %v2188_v57 }
 0x1ba   : > { %v781_v22 = vmul.f32 %v1936_v45, %v2584_v47  ;;  %v994_v47 = vld [vmem:[#allocation2 + $0x50] sm:$0xff] }
 0x1bc   : > { %v989_v49 = vmul.f32 %v979_v48, %v781_v22 }
 0x1be   : > { %v1009_v50 = vpack.c.bf16 %v989_v49, %v988_v31 }
 0x1c0   : > { %1169 = vmatmul.mubr.bf16.gmra.mxu1 %v1009_v50 }
 0x267   : > { %v1140_v52 = vpop.f32.mrf.mxu0 }
 0x268   : > { %v1179_v54 = vadd.f32 %v1140_v52, %v990_v51 }
 0x269   : > { %v1142_v55 = vpop.f32.mrf.mxu0 }
 0x26a   : > { %1195 = vst [vmem:[#allocation2 + $0x30] sm:$0xff] %v1179_v54  ;;  %v1180_v40 = vadd.f32 %v1142_v55, %v991_v53 }
 0x26b   : > { %v1144_v58 = vpop.f32.mrf.mxu0 }
 0x26c   : > { %1196 = vst [vmem:[#allocation2] sm:$0xff] %v1180_v40  ;;  %v1181_v57 = vadd.f32 %v1144_v58, %v992_v56 }
 0x26d   : > { %v1146_v61 = vpop.f32.mrf.mxu0 }
 0x26e   : > { %1197 = vst [vmem:[#allocation2 + $0x58] sm:$0xff] %v1181_v57  ;;  %v1182_v59 = vadd.f32 %v1146_v61, %v993_v60 }
 0x26f   : > { %v1150_v62 = vpop.f32.mrf.mxu0 }
 0x270   : > { %1198 = vst [vmem:[#allocation2 + $0x18] sm:$0xff] %v1182_v59  ;;  %v1183_v1 = vadd.f32 %v1150_v62, %v994_v47 }
 0x271   : > { %v1152_v2 = vpop.f32.mrf.mxu0 }
 0x272   : > { %1199 = vst [vmem:[#allocation2 + $0x50] sm:$0xff] %v1183_v1  ;;  %v1184_v5 = vadd.f32 %v1152_v2, %v995_v0 }
 0x273   : > { %v1154_v6 = vpop.f32.mrf.mxu0 }
 0x274   : > { %1200 = vst [vmem:[#allocation2 + $0x68] sm:$0xff] %v1184_v5  ;;  %v1185_v8 = vadd.f32 %v1154_v6, %v996_v3 }
 0x275   : > { %v1156_v10 = vpop.f32.mrf.mxu0 }
 0x276   : > { %1201 = vst [vmem:[#allocation2 + $0x8] sm:$0xff] %v1185_v8  ;;  %v1186_v11 = vadd.f32 %v1156_v10, %v997_v7 }
 0x278   : > { %1202 = vst [vmem:[#allocation2 + $0x48] sm:$0xff] %v1186_v11  ;;  %v1160_v13 = vpop.f32.mrf.mxu1 }
 0x279   : > { %v1187_v16 = vadd.f32 %v1160_v13, %v998_v12 }
 0x27a   : > { %v1162_v63 = vpop.f32.mrf.mxu1 }
 0x27b   : > { %1203 = vst [vmem:[#allocation2 + $0x40] sm:$0xff] %v1187_v16  ;;  %v1188_v18 = vadd.f32 %v1162_v63, %v999_v14 }
 0x27c   : > { %v1164_v4 = vpop.f32.mrf.mxu1 }
 0x27d   : > { %1204 = vst [vmem:[#allocation2 + $0x20] sm:$0xff] %v1188_v18  ;;  %v1189_v20 = vadd.f32 %v1164_v4, %v1000_v17 }
 0x27e   : > { %v1166_v21 = vpop.f32.mrf.mxu1 }
 0x27f   : > { %1205 = vst [vmem:[#allocation2 + $0x10] sm:$0xff] %v1189_v20  ;;  %v1190_v24 = vadd.f32 %v1166_v21, %v1001_v19 }
 0x280   : > { %v1170_v25 = vpop.f32.mrf.mxu1 }
 0x281   : > { %1206 = vst [vmem:[#allocation2 + $0x38] sm:$0xff] %v1190_v24  ;;  %v1191_v27 = vadd.f32 %v1170_v25, %v1002_v23 }
 0x282   : > { %v1172_v28 = vpop.f32.mrf.mxu1 }
 0x283   : > { %1207 = vst [vmem:[#allocation2 + $0x60] sm:$0xff] %v1191_v27  ;;  %v1192_v9 = vadd.f32 %v1172_v28, %v1003_v26 }
 0x284   : > { %v1174_v30 = vpop.f32.mrf.mxu1 }
 0x285   : > { %1208 = vst [vmem:[#allocation2 + $0x70] sm:$0xff] %v1192_v9  ;;  %v1193_v33 = vadd.f32 %v1174_v30, %v1004_v29  ;;  %1214 = sbr.rel (%p1587_p1) target bundleno = 668 (0x29c), region = 72 }
 0x286   : > { %v1176_v34 = vpop.f32.mrf.mxu1 }
 0x287   : > { %1209 = vst [vmem:[#allocation2 + $0x78] sm:$0xff] %v1193_v33  ;;  %v1194_v35 = vadd.f32 %v1176_v34, %v1005_v32 }
 0x289   : > { %1210 = vst [vmem:[#allocation2 + $0x28] sm:$0xff] %v1194_v35 }
 0x28a   : > { %v1233_v15 = vlaneseq  ;;  %v1231_v37 = vld [vmem:[%s2751_s8] sm:$0x3]  ;;  %v1215_v38 = vld [vmem:[#allocation2 + $0x30] sm:$0xff]  ;;  %v1217_v43 = vld [vmem:[#allocation2 + $0x58] sm:$0xff] }
 0x28b   : > { %v1216_v39 = vld [vmem:[#allocation2] sm:$0xff]  ;;  %v1218_v44 = vld [vmem:[#allocation2 + $0x18] sm:$0xff]  ;;  %v1219_v45 = vld [vmem:[#allocation2 + $0x50] sm:$0xff] }
 0x28c   : > { %v1234_v36 = vshrl.u32 %v1233_v15, 7  ;;  %v1220_v48 = vld [vmem:[#allocation2 + $0x68] sm:$0xff]  ;;  %v1223_v50 = vld [vmem:[#allocation2 + $0x40] sm:$0xff]  ;;  %v1225_v56 = vld [vmem:[#allocation2 + $0x10] sm:$0xff] }
 0x28d   : > { %v1221_v31 = vld [vmem:[#allocation2 + $0x8] sm:$0xff]  ;;  %v1224_v51 = vld [vmem:[#allocation2 + $0x20] sm:$0xff]  ;;  %v1226_v40 = vld [vmem:[#allocation2 + $0x38] sm:$0xff] }
 0x28e   : > { %v1235_v41 = vsub.s32 0, %v1234_v36  ;;  %v1239_v42 = vsub.s32 1, %v1234_v36  ;;  %v1222_v49 = vld [vmem:[#allocation2 + $0x48] sm:$0xff]  ;;  %v1227_v47 = vld [vmem:[#allocation2 + $0x60] sm:$0xff]  ;;  %v1228_v59 = vld [vmem:[#allocation2 + $0x70] sm:$0xff] }
 0x28f   : > { %v1229_v62 = vld [vmem:[#allocation2 + $0x78] sm:$0xff] }
 0x290   : > { %v1236_v22 = vrot.slane %v1231_v37, %v1235_v41  ;;  %v1240_v46 = vrot.slane %v1231_v37, %v1239_v42  ;;  %v1230_v5 = vld [vmem:[#allocation2 + $0x28] sm:$0xff] }
 0x292   : > { %v1243_v52 = vadd.f32 %v1236_v22, %v1215_v38  ;;  %v1244_v53 = vadd.f32 %v1240_v46, %v1216_v39  ;;  %v1245_v54 = vadd.f32 %v1236_v22, %v1217_v43  ;;  %v1246_v55 = vadd.f32 %v1240_v46, %v1218_v44 }
 0x293   : > { %v1247_v58 = vadd.f32 %v1236_v22, %v1219_v45  ;;  %v1248_v60 = vadd.f32 %v1240_v46, %v1220_v48  ;;  %v1249_v57 = vadd.f32 %v1236_v22, %v1221_v31  ;;  %v1250_v61 = vadd.f32 %v1240_v46, %v1222_v49 }
 0x294   : > { %v1606_v0 = vpack.c.bf16 %v1244_v53, %v1243_v52  ;;  %v1607_v1 = vpack.c.bf16 %v1246_v55, %v1245_v54  ;;  %v1251_v2 = vadd.f32 %v1236_v22, %v1223_v50  ;;  %v1252_v3 = vadd.f32 %v1240_v46, %v1224_v51 }
 0x295   : > { %v1608_v6 = vpack.c.bf16 %v1248_v60, %v1247_v58  ;;  %v1609_v7 = vpack.c.bf16 %v1250_v61, %v1249_v57  ;;  %v1253_v8 = vadd.f32 %v1236_v22, %v1225_v56  ;;  %v1254_v10 = vadd.f32 %v1240_v46, %v1226_v40 }
 0x296   : > { %1307 = vst [vmem:[%s2497_s29] sm:$0xff] %v1606_v0  ;;  %1308 = vst [vmem:[%s2497_s29 + $0x8] sm:$0xff] %v1607_v1  ;;  %v1610_v11 = vpack.c.bf16 %v1252_v3, %v1251_v2  ;;  %v1255_v12 = vadd.f32 %v1236_v22, %v1227_v47  ;;  %v1256_v13 = vadd.f32 %v1240_v46, %v1228_v59 }
 0x297   : > { %v1257_v14 = vadd.f32 %v1236_v22, %v1229_v62  ;;  %1309 = vst [vmem:[%s2497_s29 + $0x10] sm:$0xff] %v1608_v6  ;;  %1310 = vst [vmem:[%s2497_s29 + $0x18] sm:$0xff] %v1609_v7  ;;  %v1611_v16 = vpack.c.bf16 %v1254_v10, %v1253_v8  ;;  %v1258_v63 = vadd.f32 %v1240_v46, %v1230_v5 }
 0x298   : > { %1311 = vst [vmem:[%s2497_s29 + $0x20] sm:$0xff] %v1610_v11  ;;  %v1612_v17 = vpack.c.bf16 %v1256_v13, %v1255_v12 }
 0x299   : > { %1312 = vst [vmem:[%s2497_s29 + $0x28] sm:$0xff] %v1611_v16  ;;  %v1613_v18 = vpack.c.bf16 %v1258_v63, %v1257_v14 }
 0x29a   : > { %1313 = vst [vmem:[%s2497_s29 + $0x30] sm:$0xff] %v1612_v17 }
 0x29b   : > { %1314 = vst [vmem:[%s2497_s29 + $0x38] sm:$0xff] %v1613_v18 }
 0x29c PF: > { %s2752_s13 = sld [smem:[#allocation18_spill]]  ;;  %s1330_s2 = sshll.u32 %s2497_s29, 4  ;;  %s2621_s2 = int_to_ptr.vmem [resolvable:$true] %s1330_s2 }
 0x29d   : > { %s2753_s22 = sld [smem:[#allocation23_spill]]  ;;  %s1316_s18 = scalar_lea.sflag [#allocation5], %s2459_s20 }
 0x29e   : > { %s2754_s10 = sld [smem:[#allocation31_spill]]  ;;  %s2049_s19 = scalar_lea.vmem %s2621_s2, 1024 }
 0x29f   : > { %p2050_p6 = scmp.ne.s32.totalorder %s2621_s2, %s2049_s19  ;;  %s2189_s23 = smov [#allocation11]  }
 0x2a0   : > { %s2053_s0 = sshll.u32 %s2189_s23, 4  ;;  %s2054_s0 = int_to_ptr.vmem [resolvable:$false] %s2053_s0 }
 0x2a1   : > { %s2055_s30 = scalar_lea.vmem %s2054_s0, 2048  ;;  %p2056_p2 = scmp.lt.s32.totalorder %s2621_s2, %s2054_s0 }
 0x2a2   : > { %s1615_s6 = sshll.u32 %s2752_s13, 10  ;;  %p2057_p3 = scmp.lt.s32.totalorder %s2055_s30, %s2049_s19 }
 0x2a3   : > { %p2756_p0 = scmp.ne.s32.totalorder %s2753_s22, 0 }
 0x2a4   : > { %s2755_s1 = smov %s2754_s10  ;;  %s2618_s17 = scalar_lea.hbm %s2754_s10, %s1615_s6 }
 0x2a5   : > { %p2051_p9 = pnand %p2050_p6, %p2756_p0  ;;  %p2058_p8 = por %p2057_p3, %p2056_p2 }
 0x2a7   : > { %p2052_p11 = pneg %p2051_p9 }
 0x2a9   : > { %p2059_p13 = pnand %p2058_p8, %p2052_p11 }
 0x2ab   : > { %2062 = shalt.err (!%p2059_p13)
}
 0x2ac   : > { %s2063_s29 = scalar_lea.hbm %s2618_s17, 1024  ;;  %s2067_s12 = scalar_lea.hbm %s2755_s1, 2048 }
 0x2ad   : > { %p2064_p12 = scmp.ne.s32.totalorder %s2618_s17, %s2063_s29  ;;  %p2068_p7 = scmp.lt.s32.totalorder %s2618_s17, %s2755_s1 }
 0x2ae   : > { %p2069_p10 = scmp.lt.s32.totalorder %s2067_s12, %s2063_s29 }
 0x2af   : > { %p2065_p5 = pnand %p2064_p12, %p2756_p0 }
 0x2b0   : > { %p2070_p1 = por %p2069_p10, %p2068_p7 }
 0x2b1   : > { %p2066_p4 = pneg %p2065_p5 }
 0x2b3   : > { %p2071_p6 = pnand %p2070_p1, %p2066_p4 }
 0x2b5   : > { %2074 = shalt.err (!%p2071_p6)
}
 0x2b6   : > { %s2190_s15 = smov 128   ;;  %s2191_s8 = smov 8  }
 0x2b7   : > { %1720 = dma.vmem_to_hbm [thread:$0]  (%p2756_p0), %s2621_s2, 1024, %s2618_s17, %s1316_s18, %s2190_s15, %s2190_s15, %s2191_s8  }
 0x2b8 PF: > { %p1740_p9 = scmp.ge.s32.totalorder %s2177_s11, 2  ;;  %s1345_s13 = sand.u32 1, %s2149_s27  }
 0x2b9   : > { %p2757_p11 = scmp.ne.s32.totalorder %s2734_s3, 0  ;;  %s1346_s6 = scalar_lea.sflag [#allocation5], %s1345_s13 }
 0x2bb   : > { %p1736_p2 = pnand %p1740_p9, %p2757_p11 }
 0x2bd   : > { %p1737_p3 = pneg %p1736_p2 }
 0x2bf   : > { %2132 = dma.done.wait (%p1737_p3), %s1346_s6, 1024  }
 0x2c0   : > { %2134 = vsyncadd (%p1737_p3), %s1346_s6, 4294966272  ;;  %s29_s11 = sadd.s32 1, %s2177_s11   ;;  %s2758_s22 = sld [smem:[#allocation21_spill]] }
 0x2c1   : > { %p26_p8 = scmp.ge.s32.totalorder %s29_s11, 6   ;;  %s2759_s20 = sld [smem:[#allocation16_spill]] }
 0x2c2   : > { %s2760_s29 = sld [smem:[#allocation24_spill]]  ;;  %s2764_s24 = smov %s2141_s25 }
 0x2c3   : > { %s2761_s8 = sld [smem:[#allocation19_spill]]  ;;  %s2765_s25 = smov %s2145_s26 }
 0x2c4   : > { %s2762_s4 = sld [smem:[#allocation20_spill]]  ;;  %s2767_s27 = smov %s2153_s28 }
 0x2c5   : > { %s2763_s10 = sld [smem:[#allocation22_spill]]  ;;  %s2769_s30 = smov %s2169_s9 }
 0x2c6   : > { %s2766_s26 = smov %s2758_s22  ;;  %28 = sbr.rel (!%p26_p8) target bundleno = 21 (0x15), region = 144 }
 0x2c7   : > { %s2768_s28 = smov %s2759_s20 }
 0x2ca   : > { %s2770_s9 = smov %s2762_s4 }
 0x2cb   :  { %1351 = vsyncpa [#allocation4], 1 }
 0x2cc   :  { %1353 = vsyncpa [#allocation4 + $0x1], 1 }
 0x2cd   :  { %1354 = vsyncpa [#allocation7], 1 }
 0x2ce   :  { %1356 = vsyncpa [#allocation7 + $0x1], 1 }
 0x2cf   :  { %1357 = vsyncpa [#allocation10], 1 }
 0x2d0   :  { %1359 = vsyncpa [#allocation10 + $0x1], 1 }
 0x2d1   :  { %1360 = vsyncpa [#allocation5], 1 }
 0x2d2   :  { %1362 = vsyncpa [#allocation5 + $0x1], 1 }

</bundles_post_ra>
